<compile_context>
chip_gen: v7x
topology: tpu7x:2x2x1
jax: 0.10.0
libtpu: 0.0.40
codegen_flags: <defaults>
</compile_context>

<pallas_src>
import functools

import jax
import jax.numpy as jnp
from jax.experimental import pallas as pl
from jax.experimental.pallas import tpu as pltpu


def _round_up(x, m):
    return ((x + m - 1) // m) * m


def _conv_bn_relu_kernel(x_ref, w_ref, s_ref, b_ref, o_ref, *,
                         TR, OW, KH, KW, C, stride):
    """relu( conv(x, w) * scale + bias ) for one (image, row-tile) grid cell.

    x_ref: (H_alloc, W_pad, C)   bf16  whole padded image (resident across row tiles)
    w_ref: (KH*KW*C, O_pad)      bf16  im2col-ordered conv weight
    s_ref: (1, O_pad)            f32   BN scale   (gamma / sqrt(var+eps))
    b_ref: (1, O_pad)            f32   BN bias    (beta - mean*scale)
    o_ref: (TR, OW, O_pad)       bf16  one row tile of the NHWC output
    """
    rt = pl.program_id(1)
    in_rows = (TR - 1) * stride + KH
    r0 = pl.multiple_of(rt * (TR * stride), TR * stride)
    x = x_ref[pl.ds(r0, in_rows)]                         # (in_rows, W_pad, C)

    # Per-tile im2col in VMEM: KH*KW shifted views concatenated along channels,
    # feeding ONE large-K MXU matmul (K = KH*KW*C) instead of KH*KW tiny-K dots.
    taps = []
    for kh in range(KH):
        for kw in range(KW):
            taps.append(jax.lax.slice(
                x,
                (kh, kw, 0),
                (kh + (TR - 1) * stride + 1, kw + (OW - 1) * stride + 1, C),
                (stride, stride, 1)))                     # (TR, OW, C)
    a = jnp.concatenate(taps, axis=-1).reshape(TR * OW, KH * KW * C)

    acc = jnp.dot(a, w_ref[...], preferred_element_type=jnp.float32)   # (TR*OW, O_pad)
    y = jnp.maximum(acc * s_ref[...] + b_ref[...], 0.0)                # BN + ReLU in f32
    o_ref[...] = y.reshape(TR, OW, o_ref.shape[-1]).astype(o_ref.dtype)


def basic_conv2d(x_nchw, weight_ocKhKw, gamma, beta, running_mean, running_var,
                 *, stride=1, padding=1, eps=1e-3,
                 compute_dtype=jnp.bfloat16, row_tile=None):
    """Forward pass of basicConv2d.

    x_nchw:        (N, C, H, W)      float32
    weight_ocKhKw: (O, C, KH, KW)    float32 (PyTorch Conv2d weight layout)
    gamma/beta/running_mean/running_var: (O,) float32
    returns:       (N, O, OH, OW)    float32
    """
    N, C, H, W = x_nchw.shape
    O, Cw, KH, KW = weight_ocKhKw.shape
    assert Cw == C

    OH = (H + 2 * padding - KH) // stride + 1
    OW = (W + 2 * padding - KW) // stride + 1
    H_pad, W_pad = H + 2 * padding, W + 2 * padding
    O_pad = _round_up(O, 128)                      # lane-dense output channels

    if row_tile is None:                           # ~1 MiB f32 accumulator per tile
        row_tile = max(1, min(OH, (1 << 20) // max(1, OW * O_pad * 4)))
    TR = int(row_tile)
    n_rt = (OH + TR - 1) // TR
    OH_alloc = n_rt * TR
    # rows of *padded* input read by the last row tile; pad HBM input up to this
    H_alloc = max(H_pad, (OH_alloc - 1) * stride + KH)

    # ---- light glue (fused with the unavoidable layout pass): NCHW->NHWC, cast, pad ----
    x = jnp.transpose(x_nchw, (0, 2, 3, 1)).astype(compute_dtype)
    x = jnp.pad(x, ((0, 0), (padding, H_alloc - H - padding),
                    (padding, padding), (0, 0)))

    # im2col-ordered weight (kh, kw, c) x O, lane-padded on O; BN stays in the epilogue
    w = jnp.transpose(weight_ocKhKw, (2, 3, 1, 0)).reshape(KH * KW * C, O)
    w = jnp.pad(w, ((0, 0), (0, O_pad - O))).astype(compute_dtype)

    scale = gamma / jnp.sqrt(running_var + eps)                       # (O,)
    bias = beta - running_mean * scale                                # (O,)
    s = jnp.pad(scale, (0, O_pad - O)).reshape(1, O_pad).astype(jnp.float32)
    b = jnp.pad(bias, (0, O_pad - O)).reshape(1, O_pad).astype(jnp.float32)

    # ---- VMEM budget: 2x image + 2x out tile, 1x weight/bias, plus live temporaries ----
    it = jnp.dtype(compute_dtype).itemsize
    lane_c = _round_up(C, 128)
    lane_k = _round_up(KH * KW * C, 128)
    in_img = H_alloc * _round_up(W_pad, 16) * lane_c * it
    w_bytes = _round_up(KH * KW * C, 16) * O_pad * it + 2 * 16 * O_pad * 4
    out_blk = TR * _round_up(OW, 16) * O_pad * it
    M = TR * OW
    live = (_round_up(M, 16) * lane_k * it         # concatenated im2col tile (bf16)
            + 2 * _round_up(M, 8) * O_pad * 4      # f32 accumulator + epilogue temp
            + in_img)                              # shifted-view temporaries
    vmem_est = 2 * in_img + 2 * out_blk + w_bytes + 2 * live + (8 << 20)
    try:
        phys = pltpu.get_tpu_info().vmem_capacity_bytes
    except Exception:
        phys = 64 << 20                            # conservative (v7x per-core VMEM)
    cap = max(32 << 20, phys - (12 << 20))         # leave compiler scratch headroom
    vmem_limit = int(min(max(vmem_est, 32 << 20), cap))

    kernel = functools.partial(_conv_bn_relu_kernel, TR=TR, OW=OW,
                               KH=KH, KW=KW, C=C, stride=stride)

    out = pl.pallas_call(
        kernel,
        out_shape=jax.ShapeDtypeStruct((N, OH_alloc, OW, O_pad), compute_dtype),
        grid_spec=pltpu.PrefetchScalarGridSpec(
            num_scalar_prefetch=0,
            grid=(N, n_rt),
            in_specs=[
                # whole padded image, resident across the row-tile axis
                pl.BlockSpec((None, H_alloc, W_pad, C), lambda n, r: (n, 0, 0, 0)),
                # constant blocks: fetched once
                pl.BlockSpec((KH * KW * C, O_pad), lambda n, r: (0, 0)),
                pl.BlockSpec((1, O_pad), lambda n, r: (0, 0)),
                pl.BlockSpec((1, O_pad), lambda n, r: (0, 0)),
            ],
            out_specs=pl.BlockSpec((None, TR, OW, O_pad),
                                   lambda n, r: (n, r, 0, 0)),
        ),
        compiler_params=pltpu.CompilerParams(
            dimension_semantics=("parallel", "parallel"),
            vmem_limit_bytes=vmem_limit),
    )(x, w, s, b)

    out = out[:, :OH, :, :O]                                 # drop row/channel padding
    return jnp.transpose(out, (0, 3, 1, 2)).astype(jnp.float32)   # NHWC -> NCHW f32


def _reference(x, w, gamma, beta, mean, var, *, stride, padding, eps):
    y = jax.lax.conv_general_dilated(
        x, w, window_strides=(stride, stride),
        padding=[(padding, padding), (padding, padding)],
        dimension_numbers=("NCHW", "OIHW", "NCHW"))
    s = (gamma / jnp.sqrt(var + eps)).reshape(1, -1, 1, 1)
    b = (beta - mean * gamma / jnp.sqrt(var + eps)).reshape(1, -1, 1, 1)
    return jnp.maximum(y * s + b, 0.0)


if __name__ == "__main__":
    key = jax.random.PRNGKey(0)
    k_x, k_w = jax.random.split(key)

    N, C, H, W = 2, 4, 16, 16
    O, KH, KW = 8, 3, 3
    stride, padding, eps = 1, 1, 1e-3

    x = jax.random.normal(k_x, (N, C, H, W), dtype=jnp.float32)
    weight = jax.random.normal(k_w, (O, C, KH, KW), dtype=jnp.float32) * 0.1

    # deterministic, non-trivial BN parameters
    gamma = jnp.linspace(0.5, 1.5, O, dtype=jnp.float32)
    beta = jnp.linspace(-0.2, 0.2, O, dtype=jnp.float32)
    running_mean = jnp.linspace(-0.1, 0.1, O, dtype=jnp.float32)
    running_var = jnp.linspace(0.8, 1.2, O, dtype=jnp.float32)

    ref = _reference(x, weight, gamma, beta, running_mean, running_var,
                     stride=stride, padding=padding, eps=eps)

    # Run both the default (single row tile per image) and an explicit multi-row-tile
    # config where the tile does not divide OH, to exercise the halo/padding path.
    for rt in (None, 6):
        fwd = jax.jit(functools.partial(basic_conv2d, stride=stride,
                                        padding=padding, eps=eps, row_tile=rt))
        out = jax.block_until_ready(fwd(x, weight, gamma, beta,
                                        running_mean, running_var))
        assert out.shape == (N, O, H, W), out.shape
        # bf16 matmul inputs and bf16 kernel output with f32 accumulation/epilogue
        err = float(jnp.max(jnp.abs(out - ref)))
        assert err < 1e-1, f"row_tile={rt}: max abs err {err}"

    print("KERNEL_OK")
</pallas_src>

<mosaic_0001>
module attributes {stable_mosaic.version = 11 : i64} {
  func.func @_conv_bn_relu_kernel(%arg0: i32, %arg1: i32, %arg2: memref<1x18x18x4xbf16, #tpu.memory_space<vmem>>, %arg3: memref<36x128xbf16, #tpu.memory_space<vmem>>, %arg4: memref<1x128xf32, #tpu.memory_space<vmem>>, %arg5: memref<1x128xf32, #tpu.memory_space<vmem>>, %arg6: memref<1x16x16x128xbf16, #tpu.memory_space<vmem>>) attributes {dimension_semantics = [#tpu.dimension_semantics<parallel>, #tpu.dimension_semantics<parallel>], iteration_bounds = array<i64: 2, 1>, scalar_prefetch = 0 : i64, scratch_operands = 0 : i64, tpu.core_type = #tpu.core_type<tc>, window_params = [{transform_indices = @transform_0, window_bounds = array<i64: 1, 18, 18, 4>}, {pipeline_mode = #tpu.pipeline_mode<synchronous>, transform_indices = @transform_1, window_bounds = array<i64: 36, 128>}, {pipeline_mode = #tpu.pipeline_mode<synchronous>, transform_indices = @transform_2, window_bounds = array<i64: 1, 128>}, {pipeline_mode = #tpu.pipeline_mode<synchronous>, transform_indices = @transform_3, window_bounds = array<i64: 1, 128>}, {transform_indices = @transform_4, window_bounds = array<i64: 1, 16, 16, 128>}]} {
    %c16_i32 = arith.constant 16 : i32
    %0 = arith.muli %arg1, %c16_i32 : i32
    %1 = tpu.assume_multiple %0, 16 : i32
    %c0 = arith.constant 0 : index
    %2 = arith.index_cast %1 : i32 to index
    %c0_0 = arith.constant 0 : index
    %c0_1 = arith.constant 0 : index
    %3 = vector.load %arg2[%c0, %2, %c0_0, %c0_1] : memref<1x18x18x4xbf16, #tpu.memory_space<vmem>>, vector<1x18x18x4xbf16>
    %4 = vector.shape_cast %3 : vector<1x18x18x4xbf16> to vector<18x18x4xbf16>
    %5 = vector.extract_strided_slice %4 {offsets = [0, 0, 0], sizes = [16, 16, 4], strides = [1, 1, 1]} : vector<18x18x4xbf16> to vector<16x16x4xbf16>
    %6 = vector.extract_strided_slice %4 {offsets = [0, 1, 0], sizes = [16, 16, 4], strides = [1, 1, 1]} : vector<18x18x4xbf16> to vector<16x16x4xbf16>
    %7 = vector.extract_strided_slice %4 {offsets = [0, 2, 0], sizes = [16, 16, 4], strides = [1, 1, 1]} : vector<18x18x4xbf16> to vector<16x16x4xbf16>
    %8 = vector.extract_strided_slice %4 {offsets = [1, 0, 0], sizes = [16, 16, 4], strides = [1, 1, 1]} : vector<18x18x4xbf16> to vector<16x16x4xbf16>
    %9 = vector.extract_strided_slice %4 {offsets = [1, 1, 0], sizes = [16, 16, 4], strides = [1, 1, 1]} : vector<18x18x4xbf16> to vector<16x16x4xbf16>
    %10 = vector.extract_strided_slice %4 {offsets = [1, 2, 0], sizes = [16, 16, 4], strides = [1, 1, 1]} : vector<18x18x4xbf16> to vector<16x16x4xbf16>
    %11 = vector.extract_strided_slice %4 {offsets = [2, 0, 0], sizes = [16, 16, 4], strides = [1, 1, 1]} : vector<18x18x4xbf16> to vector<16x16x4xbf16>
    %12 = vector.extract_strided_slice %4 {offsets = [2, 1, 0], sizes = [16, 16, 4], strides = [1, 1, 1]} : vector<18x18x4xbf16> to vector<16x16x4xbf16>
    %13 = vector.extract_strided_slice %4 {offsets = [2, 2, 0], sizes = [16, 16, 4], strides = [1, 1, 1]} : vector<18x18x4xbf16> to vector<16x16x4xbf16>
    %14 = tpu.concatenate %5, %6, %7, %8, %9, %10, %11, %12, %13 in 2 : vector<16x16x4xbf16>, vector<16x16x4xbf16>, vector<16x16x4xbf16>, vector<16x16x4xbf16>, vector<16x16x4xbf16>, vector<16x16x4xbf16>, vector<16x16x4xbf16>, vector<16x16x4xbf16>, vector<16x16x4xbf16> -> vector<16x16x36xbf16>
    %15 = vector.shape_cast %14 : vector<16x16x36xbf16> to vector<256x36xbf16>
    %c0_2 = arith.constant 0 : index
    %c0_3 = arith.constant 0 : index
    %16 = vector.load %arg3[%c0_2, %c0_3] : memref<36x128xbf16, #tpu.memory_space<vmem>>, vector<36x128xbf16>
    %cst = arith.constant dense<0.000000e+00> : vector<256x128xf32>
    %17 = tpu.matmul %15, %16, %cst {dimension_numbers = #tpu.dot_dimension_numbers<[1], [0], [0], [1], [0, 0, 1, 1], [], []>} : vector<256x36xbf16>, vector<36x128xbf16>, vector<256x128xf32> -> vector<256x128xf32>
    %c0_4 = arith.constant 0 : index
    %c0_5 = arith.constant 0 : index
    %18 = vector.load %arg4[%c0_4, %c0_5] : memref<1x128xf32, #tpu.memory_space<vmem>>, vector<1x128xf32>
    %19 = vector.broadcast %18 : vector<1x128xf32> to vector<256x128xf32>
    %20 = arith.mulf %17, %19 : vector<256x128xf32>
    %c0_6 = arith.constant 0 : index
    %c0_7 = arith.constant 0 : index
    %21 = vector.load %arg5[%c0_6, %c0_7] : memref<1x128xf32, #tpu.memory_space<vmem>>, vector<1x128xf32>
    %22 = vector.broadcast %21 : vector<1x128xf32> to vector<256x128xf32>
    %23 = arith.addf %20, %22 : vector<256x128xf32>
    %cst_8 = arith.constant 0.000000e+00 : f32
    %24 = vector.broadcast %cst_8 : f32 to vector<256x128xf32>
    %25 = arith.maximumf %23, %24 : vector<256x128xf32>
    %26 = vector.shape_cast %25 : vector<256x128xf32> to vector<16x16x128xf32>
    %27 = arith.truncf %26 : vector<16x16x128xf32> to vector<16x16x128xbf16>
    %c0_9 = arith.constant 0 : index
    %c0_10 = arith.constant 0 : index
    %c0_11 = arith.constant 0 : index
    %c0_12 = arith.constant 0 : index
    %28 = vector.load %arg6[%c0_9, %c0_10, %c0_11, %c0_12] : memref<1x16x16x128xbf16, #tpu.memory_space<vmem>>, vector<1x16x16x128xbf16>
    %29 = vector.shape_cast %28 : vector<1x16x16x128xbf16> to vector<16x16x128xbf16>
    %30 = vector.shape_cast %27 : vector<16x16x128xbf16> to vector<1x16x16x128xbf16>
    tpu.vector_store %arg6[%c0_9, %c0_10, %c0_11, %c0_12], %30 {strides = array<i32>} : memref<1x16x16x128xbf16, #tpu.memory_space<vmem>>, vector<1x16x16x128xbf16>,
    return
  }
  func.func @transform_0(%arg0: i32, %arg1: i32) -> (i32, i32, i32, i32) {
    %c0_i32 = arith.constant 0 : i32
    %c0_i32_0 = arith.constant 0 : i32
    %c0_i32_1 = arith.constant 0 : i32
    %c0_i32_2 = arith.constant 0 : i32
    return %arg0, %c0_i32, %c0_i32_0, %c0_i32_1 : i32, i32, i32, i32
  }
  func.func @transform_1(%arg0: i32, %arg1: i32) -> (i32, i32) {
    %c0_i32 = arith.constant 0 : i32
    %c0_i32_0 = arith.constant 0 : i32
    %c0_i32_1 = arith.constant 0 : i32
    return %c0_i32, %c0_i32_0 : i32, i32
  }
  func.func @transform_2(%arg0: i32, %arg1: i32) -> (i32, i32) {
    %c0_i32 = arith.constant 0 : i32
    %c0_i32_0 = arith.constant 0 : i32
    %c0_i32_1 = arith.constant 0 : i32
    return %c0_i32, %c0_i32_0 : i32, i32
  }
  func.func @transform_3(%arg0: i32, %arg1: i32) -> (i32, i32) {
    %c0_i32 = arith.constant 0 : i32
    %c0_i32_0 = arith.constant 0 : i32
    %c0_i32_1 = arith.constant 0 : i32
    return %c0_i32, %c0_i32_0 : i32, i32
  }
  func.func @transform_4(%arg0: i32, %arg1: i32) -> (i32, i32, i32, i32) {
    %c0_i32 = arith.constant 0 : i32
    %c0_i32_0 = arith.constant 0 : i32
    %c0_i32_1 = arith.constant 0 : i32
    return %arg0, %arg1, %c0_i32, %c0_i32_0 : i32, i32, i32, i32
  }
}

</mosaic_0001>

<bundles_post_ra>
// kernel: basic_conv2d.1
= control target key start
LH: loop header
LB: loop body
LE: loop exit
PB: predicated region body
PF: predicated region fallthrough
CT: control target
= control target key end

     0   :  { %s2217_s15 = smov 0   ;;  %s2219_s16 = smov 0   ;;  %s3009_s0 = inlined_call_operand.vmem [shape: bf16[2,18,18,4], index: 0, kind: input, shape index: {}]   ;;  %s3010_s1 = inlined_call_operand.vmem [shape: bf16[36,128], index: 1, kind: input, shape index: {}]   ;;  %s3011_s2 = inlined_call_operand.vmem [shape: f32[1,128], index: 2, kind: input, shape index: {}]   ;;  %s3012_s3 = inlined_call_operand.vmem [shape: f32[1,128], index: 3, kind: input, shape index: {}]   ;;  %s3013_s4 = inlined_call_operand.vmem [shape: bf16[2,16,16,128], index: 4, kind: output, shape index: {}]  }
   0x1   :  { %s2221_s17 = smov 0  }
   0x2 LB: > { %s26_s18 = sadd.s32 1, %s2178_s16  ;;  %p1799_p0 = scmp.ge.s32.totalorder %s2182_s17, 1  ;;  %s2182_s17 = sphi %s2221_s17, %s14_s17   ;;  %s2178_s16 = sphi %s2219_s16, %s3015_s16   ;;  %s2174_s15 = sphi %s2217_s15, %s3014_s15  }
   0x3   : > { %p28_p1 = scmp.ge.s32.totalorder %s26_s18, 2  ;;  %p176_p2 = scmp.lt.s32.totalorder %s2182_s17, 3 }
   0x5   : > { %s3017_s18 = smov (%p28_p1, %s26_s18), 0  ;;  %p177_p3 = pnand %p1799_p0, %p176_p2 }
   0x6   : > { %p207_p4 = scmp.lt.s32.totalorder (!%p177_p3), %s2174_s15, 1  ;;  %vm635_vm0 = vcmask (!%p177_p3), 1046528   ;;  %s2184_s23 = smov (!%p177_p3), 12   ;;  %vm410_vm1 = vsmask.f32 (!%p177_p3), 7424  ;;  %vm1271_vm2 = vcmask (!%p177_p3), 1041408  }
   0x7   : > { %180 = sbr.rel (%p177_p3) target bundleno = 612 (0x264), region = 36  ;;  %s2185_s24 = smov (!%p177_p3), 8   ;;  %vm954_vm3 = vcmask (!%p177_p3), 31744   ;;  %vm987_vm4 = vcmask (!%p177_p3), 64512   ;;  %vm1053_vm5 = vcmask (!%p177_p3), 130048   ;;  %vm1020_vm6 = vcmask (!%p177_p3), 97280  }
   0x8   : > { %s2186_s25 = smov (!%p177_p3), 4   ;;  %s2187_s26 = smov (!%p177_p3), 16   ;;  %vm1086_vm7 = vcmask (!%p177_p3), 162816   ;;  %vm1119_vm8 = vcmask (!%p177_p3), 195584   ;;  %vm1152_vm9 = vcmask (!%p177_p3), 228352   ;;  %vm1185_vm10 = vcmask (!%p177_p3), 261120  }
   0x9   : > { %s2188_s27 = smov (!%p177_p3), 20   ;;  %s2189_s28 = smov (!%p177_p3), 24   ;;  %vm1238_vm11 = vcmask (!%p177_p3), 293888  }
   0xa   : > { %s2190_s7 = smov (!%p177_p3), 28   ;;  %s2191_s10 = smov (!%p177_p3), 32  }
   0xe   : > { %s3019_s15 = smov (!%p207_p4, %s2174_s15), 1 }
   0xf   : > { %s2087_s19 = smul.u32 216, %s3019_s15 }
  0x11   : > { %s2241_s22 = scalar_lea.vmem %s3009_s0, %s2087_s19  ;;  %s1894_s19 = sshll.u32 %s3019_s15, 7 }
  0x12   : > { %v2244_v0 = vld [vmem:[%s2241_s22 + $0x6c] sm:$0xff]   ;;  %v2254_v2 = vld [vmem:[%s2241_s22 + $0x60] sm:$0xff]   ;;  %v2123_v3 = vld [vmem:[%s2241_s22 + $0x68] ss:$0 sps:$4 sm:$0x11]   ;;  %s2933_s15 = scalar_lea.vmem %s3013_s4, %s1894_s19 }
  0x13   : > { %v2247_v1 = vld [vmem:[%s2241_s22 + $0xc] sm:$0xff]   ;;  %737 = vrot.lane.b32.xlu1 %v2244_v0, %s2184_s23  ;;  %v2258_v4 = vld [vmem:[%s2241_s22] sm:$0xff]   ;;  %v663_v5 = vrot.slane %v2244_v0, 1  ;;  %v660_v6 = vrot.slane %v2254_v2, 1  ;;  %v661_v7 = vrot.slane %v2123_v3, 1  ;;  %v520_v26 = vshrl.u32 %v2244_v0, 16 }
  0x14   : > { %721 = vrot.lane.b32.xlu0 %v2247_v1, %s2184_s23  ;;  %v2125_v8 = vld [vmem:[%s2241_s22 + $0x8] ss:$0 sps:$4 sm:$0x11]   ;;  %v639_v9 = vrot.slane %v2247_v1, 1  ;;  %v636_v10 = vrot.slane %v2258_v4, 1  ;;  %v424_v16 = vshrl.u32 %v2247_v1, 16 }
  0x15   : > { %v2126_v11 = vld [vmem:[%s2241_s22 + $0x74] ss:$0 sps:$4 sm:$0x11]   ;;  %v2267_v12 = vsel %vm635_vm0, %v660_v6, %v661_v7  ;;  %v637_v13 = vrot.slane %v2125_v8, 1  ;;  %v426_v17 = vshll.u32 %v2247_v1, 16  ;;  %v412_v18 = vshrl.u32 %v2258_v4, 16 }
  0x16   : > { %v2127_v14 = vld [vmem:[%s2241_s22 + $0x14] ss:$0 sps:$4 sm:$0x11]   ;;  %v664_v15 = vrot.slane %v2126_v11, 1  ;;  %v414_v22 = vshll.u32 %v2258_v4, 16  ;;  %v419_v25 = vshll.u32 %v2125_v8, 16 }
  0x17   : > { %700 = vrot.lane.b32.xlu1 %v2267_v12, %s2185_s24  ;;  %v638_v19 = vsel %vm635_vm0, %v636_v10, %v637_v13  ;;  %v640_v20 = vrot.slane %v2127_v14, 1  ;;  %v431_v21 = vshll.u32 %v2127_v14, 16  ;;  %v428_v24 = vrot.slane %v426_v17, 1  ;;  %v2289_v39 = vld [vmem:[%s2241_s22 + $0x78] sm:$0xff]   ;;  %v2337_v10 = vld [vmem:[%s2241_s22 + $0x84] sm:$0xff]  }
  0x18   : > { %684 = vrot.lane.b32.xlu0 %v638_v19, %s2185_s24  ;;  %v2279_v23 = vsel %vm635_vm0, %v663_v5, %v664_v15  ;;  %v416_v29 = vrot.slane %v414_v22, 1  ;;  %v522_v30 = vshll.u32 %v2244_v0, 16  ;;  %v421_v32 = vrot.slane %v419_v25, 1  ;;  %v2295_v46 = vld [vmem:[%s2241_s22 + $0x18] sm:$0xff]   ;;  %v2347_v14 = vld [vmem:[%s2241_s22 + $0x24] sm:$0xff]  }
  0x19   : > { %v641_v27 = vsel %vm635_vm0, %v639_v9, %v640_v20  ;;  %v433_v28 = vrot.slane %v431_v21, 1  ;;  %v429_v31 = vor.u32 %v428_v24, %v424_v16  ;;  %v527_v33 = vshll.u32 %v2126_v11, 16  ;;  %v2130_v47 = vld [vmem:[%s2241_s22 + $0x80] ss:$0 sps:$4 sm:$0x11]  }
  0x1a   : > { %v508_v34 = vshrl.u32 %v2254_v2, 16  ;;  %v417_v35 = vor.u32 %v416_v29, %v412_v18  ;;  %v524_v36 = vrot.slane %v522_v30, 1  ;;  %v510_v37 = vshll.u32 %v2254_v2, 16  ;;  %v2131_v52 = vld [vmem:[%s2241_s22 + $0x20] ss:$0 sps:$4 sm:$0x11]  }
  0x1b   : > { %702 = vrot.lane.b32.xlu1 %v2279_v23, %s2185_s24  ;;  %v515_v38 = vshll.u32 %v2123_v3, 16  ;;  %v434_v40 = vsel %vm410_vm1, %v429_v31, %v433_v28  ;;  %v529_v41 = vrot.slane %v527_v33, 1  ;;  %v534_v50 = vshll.u32 %v2289_v39, 16  ;;  %v2134_v15 = vld [vmem:[%s2241_s22 + $0x8c] ss:$0 sps:$4 sm:$0x11]  }
  0x1c   : > { %686 = vrot.lane.b32.xlu0 %v641_v27, %s2185_s24  ;;  %v422_v42 = vsel %vm410_vm1, %v417_v35, %v421_v32  ;;  %v525_v43 = vor.u32 %v524_v36, %v520_v26  ;;  %v512_v44 = vrot.slane %v510_v37, 1  ;;  %v438_v53 = vshll.u32 %v2295_v46, 16  ;;  %v2135_v18 = vld [vmem:[%s2241_s22 + $0x2c] ss:$0 sps:$4 sm:$0x11]   ;;  %v2148_v22 = vld [vmem:[%s3010_s1] sm:$0xff]  }
  0x1d   : > { %v517_v45 = vrot.slane %v515_v38, 1  ;;  %v532_v54 = vshrl.u32 %v2289_v39, 16  ;;  %v536_v55 = vrot.slane %v534_v50, 1  ;;  %v539_v56 = vshll.u32 %v2130_v47, 16  ;;  %2041 = vmatprep.subr.bf16.mxu0 %v2148_v22  ;;  %2079 = vmatprep.subr.bf16.mxu1 %v2148_v22 }
  0x1e   : > { %v2300_v48 = vsel %vm410_vm1, %v525_v43, %v529_v41  ;;  %v513_v49 = vor.u32 %v512_v44, %v508_v34  ;;  %v436_v57 = vshrl.u32 %v2295_v46, 16  ;;  %v440_v58 = vrot.slane %v438_v53, 1  ;;  %2042 = vmatpush3.bf16.msra.mxu0 %v2148_v22  ;;  %2082 = vmatpush3.bf16.msra.mxu1 %v2148_v22  ;;  %v2152_v32 = vld [vmem:[%s3010_s1 + $0x10] ss:$0 sps:$4 sm:$0x33]  }
  0x1f   : > { %605 = vrot.lane.b32.xlu1 %v434_v40, %s2186_s25  ;;  %v443_v59 = vshll.u32 %v2131_v52, 16  ;;  %v537_v60 = vor.u32 %v536_v55, %v532_v54  ;;  %v541_v61 = vrot.slane %v539_v56, 1  ;;  %v666_v6 = vrot.slane %v2289_v39, 1  ;;  %v2403_v43 = vld [vmem:[%s2241_s22 + $0x90] sm:$0xff]  }
  0x20   : > { %603 = vrot.lane.b32.xlu0 %v422_v42, %s2186_s25  ;;  %v2305_v51 = vsel %vm410_vm1, %v513_v49, %v517_v45  ;;  %v441_v62 = vor.u32 %v440_v58, %v436_v57  ;;  %v667_v7 = vrot.slane %v2130_v47, 1  ;;  %v642_v8 = vrot.slane %v2295_v46, 1  ;;  %v2408_v44 = vld [vmem:[%s2241_s22 + $0x30] sm:$0xff]   ;;  %v2138_v45 = vld [vmem:[%s2241_s22 + $0x98] ss:$0 sps:$4 sm:$0x11]  }
  0x21   : > { %v445_v63 = vrot.slane %v443_v59, 1  ;;  %v2322_v3 = vsel %vm410_vm1, %v537_v60, %v541_v61  ;;  %v643_v9 = vrot.slane %v2131_v52, 1  ;;  %v546_v16 = vshll.u32 %v2337_v10, 16  ;;  %v2139_v49 = vld [vmem:[%s2241_s22 + $0x38] ss:$0 sps:$4 sm:$0x11]  }
  0x22   : > { %v2340_v11 = vsel %vm635_vm0, %v666_v6, %v667_v7  ;;  %v544_v17 = vshrl.u32 %v2337_v10, 16  ;;  %v551_v19 = vshll.u32 %v2134_v15, 16  ;;  %v450_v20 = vshll.u32 %v2347_v14, 16 }
  0x23   : > { %621 = vrot.lane.b32.xlu1 %v2300_v48, %s2186_s25  ;;  %v2326_v5 = vsel %vm410_vm1, %v441_v62, %v445_v63  ;;  %v2344_v13 = vsel %vm635_vm0, %v642_v8, %v643_v9  ;;  %v548_v21 = vrot.slane %v546_v16, 1  ;;  %v448_v24 = vshrl.u32 %v2347_v14, 16  ;;  %v2437_v9 = vld [vmem:[%s2241_s22 + $0x9c] sm:$0xff]  }
  0x24   : > { %619 = vrot.lane.b32.xlu0 %v2305_v51, %s2186_s25  ;;  %v452_v25 = vrot.slane %v450_v20, 1  ;;  %v455_v26 = vshll.u32 %v2135_v18, 16  ;;  %v553_v29 = vrot.slane %v551_v19, 1  ;;  %v1273_v34 = vsel %vm1271_vm2, %v2152_v32, 0 }
  0x25   : > { %v549_v28 = vor.u32 %v548_v21, %v544_v17  ;;  %v669_v36 = vrot.slane %v2337_v10, 1  ;;  %v670_v37 = vrot.slane %v2134_v15, 1  ;;  %v645_v38 = vrot.slane %v2347_v14, 1  ;;  %v2142_v15 = vld [vmem:[%s2241_s22 + $0xa4] ss:$0 sps:$4 sm:$0x11]  }
  0x26   : > { %v453_v30 = vor.u32 %v452_v25, %v448_v24  ;;  %v457_v31 = vrot.slane %v455_v26, 1  ;;  %v558_v47 = vshll.u32 %v2403_v43, 16  ;;  %v462_v50 = vshll.u32 %v2408_v44, 16  ;;  %v2143_v17 = vld [vmem:[%s2241_s22 + $0x44] ss:$0 sps:$4 sm:$0x11]  }
  0x27   : > { %739 = vrot.lane.b32.xlu1 %v2289_v39, %s2184_s23  ;;  %v554_v33 = vsel %vm410_vm1, %v549_v28, %v553_v29  ;;  %v671_v41 = vsel %vm635_vm0, %v669_v36, %v670_v37  ;;  %v556_v52 = vshrl.u32 %v2403_v43, 16  ;;  %v563_v54 = vshll.u32 %v2138_v45, 16 }
  0x28   : > { %723 = vrot.lane.b32.xlu0 %v2295_v46, %s2184_s23  ;;  %v458_v35 = vsel %vm410_vm1, %v453_v30, %v457_v31  ;;  %v560_v53 = vrot.slane %v558_v47, 1  ;;  %v460_v55 = vshrl.u32 %v2408_v44, 16  ;;  %v464_v56 = vrot.slane %v462_v50, 1 }
  0x29   : > { %v467_v57 = vshll.u32 %v2139_v49, 16  ;;  %v565_v59 = vrot.slane %v563_v54, 1  ;;  %v648_v6 = vrot.slane %v2408_v44, 1  ;;  %v649_v7 = vrot.slane %v2139_v49, 1 }
  0x2a   : > { %v561_v58 = vor.u32 %v560_v53, %v556_v52  ;;  %v465_v60 = vor.u32 %v464_v56, %v460_v55  ;;  %v570_v16 = vshll.u32 %v2437_v9, 16  ;;  %v568_v19 = vshrl.u32 %v2437_v9, 16  ;;  %v2503_v56 = vld [vmem:[%s2241_s22 + $0xa8] sm:$0xff]  }
  0x2b   : > { %784 = vrot.lane.b32.xlu1 %v2300_v48, %s2187_s26  ;;  %v469_v61 = vrot.slane %v467_v57, 1  ;;  %v575_v21 = vshll.u32 %v2142_v15, 16  ;;  %v479_v25 = vshll.u32 %v2143_v17, 16  ;;  %v675_v36 = vrot.slane %v2437_v9, 1 }
  0x2c   : > { %768 = vrot.lane.b32.xlu0 %v434_v40, %s2187_s26  ;;  %v646_v40 = vrot.slane %v2135_v18, 1  ;;  %v566_v62 = vsel %vm410_vm1, %v561_v58, %v565_v59  ;;  %v572_v20 = vrot.slane %v570_v16, 1  ;;  %v676_v37 = vrot.slane %v2142_v15, 1  ;;  %v2509_v58 = vld [vmem:[%s2241_s22 + $0x48] sm:$0xff]  }
  0x2d   : > { %v470_v63 = vsel %vm410_vm1, %v465_v60, %v469_v61  ;;  %v481_v29 = vrot.slane %v479_v25, 1  ;;  %v2146_v60 = vld [vmem:[%s2241_s22 + $0xb0] ss:$0 sps:$4 sm:$0x11]   ;;  %v582_v61 = vshll.u32 %v2503_v56, 16  ;;  %v484_v15 = vshrl.u32 %v2509_v58, 16 }
  0x2e   : > { %v647_v42 = vsel %vm635_vm0, %v645_v38, %v646_v40  ;;  %v573_v26 = vor.u32 %v572_v20, %v568_v19 }
  0x2f   : > { %786 = vrot.lane.b32.xlu1 %v2322_v3, %s2187_s26 }
  0x30   : > { %770 = vrot.lane.b32.xlu0 %v2326_v5, %s2187_s26 }
  0x33   : > { %819 = vrot.lane.b32.xlu1 %v2279_v23, %s2188_s27 }
  0x34   : > { %803 = vrot.lane.b32.xlu0 %v641_v27, %s2188_s27  ;;  %v2149_v27 = vld [vmem:[%s3010_s1 + $0x8] sm:$0xff]  }
  0x35   : > { %2043 = vmatprep.subr.bf16.mxu0 %v2149_v27  ;;  %2080 = vmatprep.subr.bf16.mxu1 %v2149_v27 }
  0x36   : > { %2044 = vmatpush3.bf16.msra.mxu0 %v2149_v27  ;;  %2083 = vmatpush3.bf16.msra.mxu1 %v2149_v27  ;;  %v577_v27 = vrot.slane %v575_v21, 1 }
  0x37   : > { %821 = vrot.lane.b32.xlu1 %v2340_v11, %s2188_s27  ;;  %2085 = vmatprep.subr.msk.bf16.mxu0 %vm1271_vm2, %v2152_v32 }
  0x38   : > { %805 = vrot.lane.b32.xlu0 %v2344_v13, %s2188_s27  ;;  %2086 = vmatprep.subr.msk.bf16.mxu1 %vm1271_vm2, %v2152_v32  ;;  %v578_v31 = vsel %vm410_vm1, %v573_v26, %v577_v27 }
  0x3a   : > { %2046 = vmatpush3.bf16.msra.mxu0 %v1273_v34  ;;  %2084 = vmatpush3.bf16.msra.mxu1 %v1273_v34 }
  0x3b   : > { %856 = vrot.lane.b32.xlu1 %v2289_v39, %s2189_s28 }
  0x3c   : > { %840 = vrot.lane.b32.xlu0 %v2295_v46, %s2189_s28 }
  0x3f   : > { %858 = vrot.lane.b32.xlu1 %v2337_v10, %s2189_s28 }
  0x40   : > { %842 = vrot.lane.b32.xlu0 %v2347_v14, %s2189_s28 }
  0x43   : > { %903 = vrot.lane.b32.xlu1 %v2322_v3, %s2190_s7 }
  0x44   : > { %887 = vrot.lane.b32.xlu0 %v2326_v5, %s2190_s7 }
  0x47   : > { %905 = vrot.lane.b32.xlu1 %v554_v33, %s2190_s7 }
  0x48   : > { %889 = vrot.lane.b32.xlu0 %v458_v35, %s2190_s7 }
  0x4b   : > { %938 = vrot.lane.b32.xlu1 %v2340_v11, %s2191_s10 }
  0x4c   : > { %922 = vrot.lane.b32.xlu0 %v2344_v13, %s2191_s10 }
  0x4f   : > { %623 = vrot.lane.b32.xlu1 %v2322_v3, %s2186_s25  ;;  %v672_v3 = vrot.slane %v2403_v43, 1 }
  0x50   : > { %607 = vrot.lane.b32.xlu0 %v2326_v5, %s2186_s25  ;;  %v673_v5 = vrot.slane %v2138_v45, 1  ;;  %v677_v45 = vsel %vm635_vm0, %v675_v36, %v676_v37  ;;  %v678_v36 = vrot.slane %v2503_v56, 1  ;;  %v679_v37 = vrot.slane %v2146_v60, 1 }
  0x52   : > { %v674_v8 = vsel %vm635_vm0, %v672_v3, %v673_v5  ;;  %v486_v3 = vshll.u32 %v2509_v58, 16 }
  0x53   : > { %940 = vrot.lane.b32.xlu1 %v671_v41, %s2191_s10 }
  0x54   : > { %924 = vrot.lane.b32.xlu0 %v647_v42, %s2191_s10  ;;  %v488_v16 = vrot.slane %v486_v3, 1  ;;  %v2565_v3 = vld [vmem:[%s2241_s22 + $0xb4] sm:$0xff]  }
  0x57   : > { %625 = vrot.lane.b32.xlu1 %v554_v33, %s2186_s25 }
  0x58   : > { %609 = vrot.lane.b32.xlu0 %v458_v35, %s2186_s25 }
  0x5b   : > { %704 = vrot.lane.b32.xlu1 %v2340_v11, %s2185_s24  ;;  %v650_v11 = vsel %vm635_vm0, %v648_v6, %v649_v7  ;;  %v580_v6 = vshrl.u32 %v2503_v56, 16  ;;  %v584_v7 = vrot.slane %v582_v61, 1 }
  0x5c   : > { %688 = vrot.lane.b32.xlu0 %v2344_v13, %s2185_s24  ;;  %v2442_v13 = vld [vmem:[%s2241_s22 + $0x3c] sm:$0xff]  }
  0x5d   : > { %v474_v18 = vshll.u32 %v2442_v13, 16  ;;  %v472_v22 = vshrl.u32 %v2442_v13, 16  ;;  %v651_v40 = vrot.slane %v2442_v13, 1  ;;  %v585_v19 = vor.u32 %v584_v7, %v580_v6 }
  0x5f   : > { %706 = vrot.lane.b32.xlu1 %v671_v41, %s2185_s24  ;;  %v476_v24 = vrot.slane %v474_v18, 1 }
  0x60   : > { %690 = vrot.lane.b32.xlu0 %v647_v42, %s2185_s24 }
  0x61   : > { %v477_v28 = vor.u32 %v476_v24, %v472_v22  ;;  %v489_v22 = vor.u32 %v488_v16, %v484_v15 }
  0x63   : > { %741 = vrot.lane.b32.xlu1 %v2337_v10, %s2184_s23 }
  0x64   : > { %725 = vrot.lane.b32.xlu0 %v2347_v14, %s2184_s23 }
  0x67   : > { %743 = vrot.lane.b32.xlu1 %v2403_v43, %s2184_s23 }
  0x68   : > { %727 = vrot.lane.b32.xlu0 %v2408_v44, %s2184_s23 }
  0x6b   : > { %788 = vrot.lane.b32.xlu1 %v554_v33, %s2187_s26  ;;  %v482_v33 = vsel %vm410_vm1, %v477_v28, %v481_v29 }
  0x6c   : > { %772 = vrot.lane.b32.xlu0 %v458_v35, %s2187_s26 }
  0x6f   : > { %790 = vrot.lane.b32.xlu1 %v566_v62, %s2187_s26 }
  0x70   : > { %774 = vrot.lane.b32.xlu0 %v470_v63, %s2187_s26 }
  0x73   : > { %823 = vrot.lane.b32.xlu1 %v671_v41, %s2188_s27  ;;  %v652_v41 = vrot.slane %v2143_v17, 1 }
  0x74   : > { %807 = vrot.lane.b32.xlu0 %v647_v42, %s2188_s27 }
  0x75   : > { %v2488_v49 = vsel %vm635_vm0, %v651_v40, %v652_v41 }
  0x77   : > { %825 = vrot.lane.b32.xlu1 %v674_v8, %s2188_s27 }
  0x78   : > { %809 = vrot.lane.b32.xlu0 %v650_v11, %s2188_s27 }
  0x7b   : > { %860 = vrot.lane.b32.xlu1 %v2403_v43, %s2189_s28 }
  0x7c   : > { %844 = vrot.lane.b32.xlu0 %v2408_v44, %s2189_s28 }
  0x7f   : > { %862 = vrot.lane.b32.xlu1 %v2437_v9, %s2189_s28 }
  0x80   : > { %846 = vrot.lane.b32.xlu0 %v2442_v13, %s2189_s28 }
  0x83   : > { %907 = vrot.lane.b32.xlu1 %v566_v62, %s2190_s7 }
  0x84   : > { %891 = vrot.lane.b32.xlu0 %v470_v63, %s2190_s7 }
  0x85   : > { %v2461_v30 = vpop.permute.xlu1 %737 }
  0x86   : > { %v2465_v32 = vpop.permute.xlu0 %721 }
  0x87   : > { %909 = vrot.lane.b32.xlu1 %v578_v31, %s2190_s7 }
  0x88   : > { %893 = vrot.lane.b32.xlu0 %v482_v33, %s2190_s7 }
  0x89   : > { %v2470_v34 = vpop.permute.xlu1 %700 }
  0x8a   : > { %v2472_v35 = vpop.permute.xlu0 %684 }
  0x8b   : > { %942 = vrot.lane.b32.xlu1 %v674_v8, %s2191_s10 }
  0x8c   : > { %926 = vrot.lane.b32.xlu0 %v650_v11, %s2191_s10 }
  0x8d   : > { %v2477_v38 = vpop.permute.xlu1 %702 }
  0x8e   : > { %v2480_v42 = vpop.permute.xlu0 %686 }
  0x8f   : > { %627 = vrot.lane.b32.xlu1 %v566_v62, %s2186_s25 }
  0x90   : > { %611 = vrot.lane.b32.xlu0 %v470_v63, %s2186_s25  ;;  %v2147_v63 = vld [vmem:[%s2241_s22 + $0x50] ss:$0 sps:$4 sm:$0x11]  }
  0x91   : > { %v2485_v47 = vpop.permute.xlu1 %605  ;;  %v491_v17 = vshll.u32 %v2147_v63, 16  ;;  %v655_v40 = vrot.slane %v2147_v63, 1 }
  0x92   : > { %v604_v50 = vpop.permute.xlu0 %603 }
  0x93   : > { %944 = vrot.lane.b32.xlu1 %v677_v45, %s2191_s10  ;;  %v493_v24 = vrot.slane %v491_v17, 1  ;;  %v956_v6 = vsel %vm954_vm3, %v2258_v4, %v604_v50 }
  0x94   : > { %928 = vrot.lane.b32.xlu0 %v2488_v49, %s2191_s10  ;;  %v989_v4 = vsel %vm987_vm4, %v956_v6, %v2472_v35  ;;  %v2594_v35 = vld [vmem:[%s2241_s22 + $0x5c] ss:$0 sps:$4 sm:$0x11]  }
  0x95   : > { %v2493_v52 = vpop.permute.xlu1 %621  ;;  %v2546_v28 = vsel %vm410_vm1, %v489_v22, %v493_v24  ;;  %v592_v22 = vshrl.u32 %v2565_v3, 16 }
  0x96   : > { %v620_v53 = vpop.permute.xlu0 %619 }
  0x97   : > { %629 = vrot.lane.b32.xlu1 %v578_v31, %s2186_s25  ;;  %v972_v41 = vsel %vm954_vm3, %v2254_v2, %v620_v53 }
  0x98   : > { %613 = vrot.lane.b32.xlu0 %v482_v33, %s2186_s25  ;;  %v1005_v53 = vsel %vm987_vm4, %v972_v41, %v2470_v34  ;;  %v594_v34 = vshll.u32 %v2565_v3, 16 }
  0x99   : > { %v2497_v54 = vpop.permute.xlu1 %739  ;;  %v1038_v50 = vsel %vm1020_vm6, %v1005_v53, %v2461_v30  ;;  %v503_v53 = vshll.u32 %v2594_v35, 16 }
  0x9a   : > { %v2499_v55 = vpop.permute.xlu0 %723 }
  0x9b   : > { %708 = vrot.lane.b32.xlu1 %v674_v8, %s2185_s24  ;;  %v587_v8 = vshll.u32 %v2146_v60, 16  ;;  %v2562_v60 = vsel %vm635_vm0, %v678_v36, %v679_v37  ;;  %v596_v36 = vrot.slane %v594_v34, 1 }
  0x9c   : > { %692 = vrot.lane.b32.xlu0 %v650_v11, %s2185_s24 }
  0x9d   : > { %v2506_v57 = vpop.permute.xlu1 %784  ;;  %v589_v20 = vrot.slane %v587_v8, 1 }
  0x9e   : > { %v2511_v59 = vpop.permute.xlu0 %768  ;;  %v1071_v16 = vsel %vm1053_vm5, %v1038_v50, %v2506_v57 }
  0x9f   : > { %710 = vrot.lane.b32.xlu1 %v677_v45, %s2185_s24  ;;  %v2542_v26 = vsel %vm410_vm1, %v585_v19, %v589_v20  ;;  %v1022_v19 = vsel %vm1020_vm6, %v989_v4, %v2465_v32  ;;  %v974_v32 = vsel %vm954_vm3, %v2244_v0, %v2493_v52  ;;  %v958_v0 = vsel %vm954_vm3, %v2247_v1, %v2485_v47 }
  0xa0   : > { %694 = vrot.lane.b32.xlu0 %v2488_v49, %s2185_s24  ;;  %v1055_v57 = vsel %vm1053_vm5, %v1022_v19, %v2511_v59  ;;  %v597_v4 = vor.u32 %v596_v36, %v592_v22  ;;  %v991_v47 = vsel %vm987_vm4, %v958_v0, %v2480_v42 }
  0xa1   : > { %v2518_v62 = vpop.permute.xlu1 %786 }
  0xa2   : > { %v2522_v5 = vpop.permute.xlu0 %770 }
  0xa3   : > { %745 = vrot.lane.b32.xlu1 %v2437_v9, %s2184_s23 }
  0xa4   : > { %729 = vrot.lane.b32.xlu0 %v2442_v13, %s2184_s23 }
  0xa5   : > { %v820_v11 = vpop.permute.xlu1 %819 }
  0xa6   : > { %v2530_v18 = vpop.permute.xlu0 %803  ;;  %v1104_v20 = vsel %vm1086_vm7, %v1071_v16, %v820_v11  ;;  %v505_v16 = vrot.slane %v503_v53, 1  ;;  %v2155_v53 = vld [vmem:[%s2241_s22 + $0xc0] sm:$0xff]  }
  0xa7   : > { %747 = vrot.lane.b32.xlu1 %v2503_v56, %s2184_s23  ;;  %v1088_v11 = vsel %vm1086_vm7, %v1055_v57, %v2530_v18 }
  0xa8   : > { %731 = vrot.lane.b32.xlu0 %v2509_v58, %s2184_s23 }
  0xa9   : > { %v2536_v21 = vpop.permute.xlu1 %821 }
  0xaa   : > { %v2538_v25 = vpop.permute.xlu0 %805 }
  0xab   : > { %792 = vrot.lane.b32.xlu1 %v578_v31, %s2187_s26 }
  0xac   : > { %776 = vrot.lane.b32.xlu0 %v482_v33, %s2187_s26  ;;  %v654_v33 = vrot.slane %v2509_v58, 1 }
  0xad   : > { %v857_v27 = vpop.permute.xlu1 %856 }
  0xae   : > { %v841_v29 = vpop.permute.xlu0 %840  ;;  %v2574_v7 = vsel %vm635_vm0, %v654_v33, %v655_v40  ;;  %v1137_v24 = vsel %vm1119_vm8, %v1104_v20, %v857_v27 }
  0xaf   : > { %794 = vrot.lane.b32.xlu1 %v2542_v26, %s2187_s26  ;;  %v1121_v27 = vsel %vm1119_vm8, %v1088_v11, %v841_v29  ;;  %v1007_v29 = vsel %vm987_vm4, %v974_v32, %v2477_v38 }
  0xb0   : > { %778 = vrot.lane.b32.xlu0 %v2546_v28, %s2187_s26  ;;  %v1040_v50 = vsel %vm1020_vm6, %v1007_v29, %v2497_v54  ;;  %v759_v29 = vshll.u32 %v2155_v53, 16 }
  0xb1   : > { %v2553_v31 = vpop.permute.xlu1 %858  ;;  %v1073_v38 = vsel %vm1053_vm5, %v1040_v50, %v2518_v62 }
  0xb2   : > { %v2558_v61 = vpop.permute.xlu0 %842  ;;  %v1106_v54 = vsel %vm1086_vm7, %v1073_v38, %v2536_v21 }
  0xb3   : > { %827 = vrot.lane.b32.xlu1 %v677_v45, %s2188_s27  ;;  %v2577_v45 = vld [vmem:[%s2241_s22 + $0x54] sm:$0xff]   ;;  %v1139_v42 = vsel %vm1119_vm8, %v1106_v54, %v2553_v31 }
  0xb4   : > { %811 = vrot.lane.b32.xlu0 %v2488_v49, %s2188_s27  ;;  %v2584_v49 = vld [vmem:[%s2241_s22 + $0xbc] ss:$0 sps:$4 sm:$0x11]   ;;  %v498_v17 = vshll.u32 %v2577_v45, 16  ;;  %v496_v59 = vshrl.u32 %v2577_v45, 16  ;;  %v657_v11 = vrot.slane %v2577_v45, 1 }
  0xb5   : > { %v904_v63 = vpop.permute.xlu1 %903  ;;  %v599_v37 = vshll.u32 %v2584_v49, 16 }
  0xb6   : > { %v888_v8 = vpop.permute.xlu0 %887  ;;  %v1170_v33 = vsel %vm1152_vm9, %v1137_v24, %v904_v63  ;;  %v500_v6 = vrot.slane %v498_v17, 1  ;;  %v1024_v17 = vsel %vm1020_vm6, %v991_v47, %v2499_v55 }
  0xb7   : > { %829 = vrot.lane.b32.xlu1 %v2562_v60, %s2188_s27  ;;  %v1154_v52 = vsel %vm1152_vm9, %v1121_v27, %v888_v8  ;;  %v601_v34 = vrot.slane %v599_v37, 1  ;;  %v1057_v20 = vsel %vm1053_vm5, %v1024_v17, %v2522_v5  ;;  %v682_v37 = vrot.slane %v2584_v49, 1 }
  0xb8   : > { %813 = vrot.lane.b32.xlu0 %v2574_v7, %s2188_s27  ;;  %v501_v8 = vor.u32 %v500_v6, %v496_v59  ;;  %v1090_v22 = vsel %vm1086_vm7, %v1057_v20, %v2538_v25 }
  0xb9   : > { %v906_v15 = vpop.permute.xlu1 %905  ;;  %v602_v62 = vsel %vm410_vm1, %v597_v4, %v601_v34  ;;  %v1123_v57 = vsel %vm1119_vm8, %v1090_v22, %v2558_v61  ;;  %v761_v34 = vrot.slane %v759_v29, 1  ;;  %v800_v22 = vrot.slane %v2155_v53, 1 }
  0xba   : > { %v890_v30 = vpop.permute.xlu0 %889  ;;  %v1172_v55 = vsel %vm1152_vm9, %v1139_v42, %v906_v15  ;;  %v506_v5 = vsel %vm410_vm1, %v501_v8, %v505_v16 }
  0xbb   : > { %864 = vrot.lane.b32.xlu1 %v2503_v56, %s2189_s28  ;;  %v1156_v31 = vsel %vm1152_vm9, %v1123_v57, %v890_v30  ;;  %v681_v30 = vrot.slane %v2565_v3, 1 }
  0xbc   : > { %848 = vrot.lane.b32.xlu0 %v2509_v58, %s2189_s28 }
  0xbd   : > { %v939_v40 = vpop.permute.xlu1 %938  ;;  %v683_v59 = vsel %vm635_vm0, %v681_v30, %v682_v37  ;;  %v2744_v30 = vld [vmem:[%s2241_s22 + $0xd4] ss:$0 sps:$4 sm:$0x11]  }
  0xbe   : > { %v1203_v41 = vsel %vm1185_vm10, %v1170_v33, %v939_v40  ;;  %v923_v18 = vpop.permute.xlu0 %922  ;;  %v658_v33 = vrot.slane %v2594_v35, 1 }
  0xbf   : > { %866 = vrot.lane.b32.xlu1 %v2565_v3, %s2189_s28  ;;  %2063 = vmatprep.mubr.msk.bf16.mxu1 %vm1238_vm11, %v1203_v41  ;;  %v1187_v63 = vsel %vm1185_vm10, %v1154_v52, %v923_v18  ;;  %v2156_v18 = vld [vmem:[%s2241_s22 + $0xc8] ss:$0 sps:$4 sm:$0x11]  }
  0xc0   : > { %850 = vrot.lane.b32.xlu0 %v2577_v45, %s2189_s28  ;;  %2047 = vmatprep.mubr.msk.bf16.mxu0 %vm1238_vm11, %v1187_v63  ;;  %v659_v27 = vsel %vm635_vm0, %v657_v11, %v658_v33  ;;  %v764_v50 = vshll.u32 %v2156_v18, 16 }
  0xc1   : > { %v2634_v1 = vpop.permute.xlu1 %623 }
  0xc2   : > { %v2644_v19 = vpop.permute.xlu0 %607  ;;  %v766_v8 = vrot.slane %v764_v50, 1 }
  0xc3   : > { %911 = vrot.lane.b32.xlu1 %v2542_v26, %s2190_s7  ;;  %v960_v11 = vsel %vm954_vm3, %v2295_v46, %v2644_v19 }
  0xc4   : > { %895 = vrot.lane.b32.xlu0 %v2546_v28, %s2190_s7 }
  0xc5   : > { %v941_v21 = vpop.permute.xlu1 %940 }
  0xc6   : > { %v1205_v24 = vsel %vm1185_vm10, %v1172_v55, %v941_v21  ;;  %v925_v36 = vpop.permute.xlu0 %924  ;;  %v801_v55 = vrot.slane %v2156_v18, 1 }
  0xc7   : > { %913 = vrot.lane.b32.xlu1 %v602_v62, %s2190_s7  ;;  %2064 = vmatmul.mubr.msk.bf16.vlgmr.msra.gmra.mrb[0].mxu1 %vm1238_vm11, %v1205_v24  ;;  %v1189_v25 = vsel %vm1185_vm10, %v1156_v31, %v925_v36  ;;  %v2734_v24 = vld [vmem:[%s2241_s22 + $0xcc] sm:$0xff]   ;;  %v976_v31 = vsel %vm954_vm3, %v2289_v39, %v2634_v1 }
  0xc8   : > { %897 = vrot.lane.b32.xlu0 %v506_v5, %s2190_s7  ;;  %2048 = vmatmul.mubr.msk.bf16.vlgmr.msra.gmra.mrb[0].mxu0 %vm1238_vm11, %v1189_v25  ;;  %v878_v37 = vshll.u32 %v2734_v24, 16  ;;  %v876_v46 = vshrl.u32 %v2734_v24, 16 }
  0xc9   : > { %v2668_v15 = vpop.permute.xlu1 %625 }
  0xca   : > { %v2670_v61 = vpop.permute.xlu0 %609  ;;  %v880_v29 = vrot.slane %v878_v37, 1 }
  0xcb   : > { %946 = vrot.lane.b32.xlu1 %v2562_v60, %s2191_s10 }
  0xcc   : > { %930 = vrot.lane.b32.xlu0 %v2574_v7, %s2191_s10 }
  0xcd   : > { %v705_v32 = vpop.permute.xlu1 %704 }
  0xce   : > { %v2680_v40 = vpop.permute.xlu0 %688  ;;  %v1009_v25 = vsel %vm987_vm4, %v976_v31, %v705_v32 }
  0xcf   : > { %631 = vrot.lane.b32.xlu1 %v2542_v26, %s2186_s25  ;;  %v993_v1 = vsel %vm987_vm4, %v960_v11, %v2680_v40 }
  0xd0   : > { %615 = vrot.lane.b32.xlu0 %v2546_v28, %s2186_s25 }
  0xd1   : > { %v2687_v49 = vpop.permute.xlu1 %706 }
  0xd2   : > { %v2690_v41 = vpop.permute.xlu0 %690 }
  0xd3   : > { %948 = vrot.lane.b32.xlu1 %v683_v59, %s2191_s10 }
  0xd4   : > { %932 = vrot.lane.b32.xlu0 %v659_v27, %s2191_s10 }
  0xd5   : > { %v742_v35 = vpop.permute.xlu1 %741 }
  0xd6   : > { %v726_v6 = vpop.permute.xlu0 %725  ;;  %v1042_v33 = vsel %vm1020_vm6, %v1009_v25, %v742_v35  ;;  %v920_v25 = vrot.slane %v2744_v30, 1 }
  0xd7   : > { %633 = vrot.lane.b32.xlu1 %v602_v62, %s2186_s25  ;;  %v1026_v32 = vsel %vm1020_vm6, %v993_v1, %v726_v6 }
  0xd8   : > { %617 = vrot.lane.b32.xlu0 %v506_v5, %s2186_s25 }
  0xd9   : > { %v2696_v26 = vpop.permute.xlu1 %743 }
  0xda   : > { %v2698_v28 = vpop.permute.xlu0 %727 }
  0xdb   : > { %712 = vrot.lane.b32.xlu1 %v2562_v60, %s2185_s24  ;;  %v757_v60 = vshrl.u32 %v2155_v53, 16 }
  0xdc   : > { %696 = vrot.lane.b32.xlu0 %v2574_v7, %s2185_s24 }
  0xdd   : > { %v789_v0 = vpop.permute.xlu1 %788  ;;  %v762_v38 = vor.u32 %v761_v34, %v757_v60  ;;  %v883_v60 = vshll.u32 %v2744_v30, 16 }
  0xde   : > { %v773_v52 = vpop.permute.xlu0 %772 }
  0xdf   : > { %714 = vrot.lane.b32.xlu1 %v683_v59, %s2185_s24  ;;  %v767_v54 = vsel %vm410_vm1, %v762_v38, %v766_v8  ;;  %v1059_v19 = vsel %vm1053_vm5, %v1026_v32, %v773_v52  ;;  %v978_v52 = vsel %vm954_vm3, %v2337_v10, %v2668_v15  ;;  %v881_v38 = vor.u32 %v880_v29, %v876_v46  ;;  %v2159_v15 = vld [vmem:[%s2241_s22 + $0x6c] sm:$0xff]  }
  0xe0   : > { %698 = vrot.lane.b32.xlu0 %v659_v27, %s2185_s24  ;;  %v885_v8 = vrot.slane %v883_v60, 1 }
  0xe1   : > { %v2708_v63 = vpop.permute.xlu1 %790 }
  0xe2   : > { %v2710_v4 = vpop.permute.xlu0 %774  ;;  %v886_v31 = vsel %vm410_vm1, %v881_v38, %v885_v8 }
  0xe3   : > { %749 = vrot.lane.b32.xlu1 %v2565_v3, %s2184_s23 }
  0xe4   : > { %733 = vrot.lane.b32.xlu0 %v2577_v45, %s2184_s23 }
  0xe5   : > { %v824_v7 = vpop.permute.xlu1 %823 }
  0xe6   : > { %v808_v47 = vpop.permute.xlu0 %807 }
  0xe7   : > { %751 = vrot.lane.b32.xlu1 %v2155_v53, %s2184_s23  ;;  %v1092_v40 = vsel %vm1086_vm7, %v1059_v19, %v808_v47 }
  0xe8   : > { %735 = vrot.lane.b32.xlu0 %v2254_v2, %s2184_s23 }
  0xe9   : > { %v2719_v16 = vpop.permute.xlu1 %825 }
  0xea   : > { %v2721_v17 = vpop.permute.xlu0 %809 }
  0xeb   : > { %796 = vrot.lane.b32.xlu1 %v602_v62, %s2187_s26  ;;  %v2731_v62 = vsel %vm635_vm0, %v800_v22, %v801_v55 }
  0xec   : > { %780 = vrot.lane.b32.xlu0 %v506_v5, %s2187_s26 }
  0xed   : > { %v861_v20 = vpop.permute.xlu1 %860 }
  0xee   : > { %v845_v42 = vpop.permute.xlu0 %844 }
  0xef   : > { %798 = vrot.lane.b32.xlu1 %v767_v54, %s2187_s26 }
  0xf0   : > { %782 = vrot.lane.b32.xlu0 %v2305_v51, %s2187_s26 }
  0xf1   : > { %v863_v21 = vpop.permute.xlu1 %862 }
  0xf2   : > { %v847_v57 = vpop.permute.xlu0 %846 }
  0xf3   : > { %831 = vrot.lane.b32.xlu1 %v683_v59, %s2188_s27  ;;  %v1075_v59 = vsel %vm1053_vm5, %v1042_v33, %v789_v0 }
  0xf4   : > { %815 = vrot.lane.b32.xlu0 %v659_v27, %s2188_s27  ;;  %v1108_v27 = vsel %vm1086_vm7, %v1075_v59, %v824_v7 }
  0xf5   : > { %v908_v5 = vpop.permute.xlu1 %907  ;;  %v1141_v35 = vsel %vm1119_vm8, %v1108_v27, %v861_v20  ;;  %v962_v20 = vsel %vm954_vm3, %v2347_v14, %v2670_v61 }
  0xf6   : > { %v892_v36 = vpop.permute.xlu0 %891  ;;  %v1174_v0 = vsel %vm1152_vm9, %v1141_v35, %v908_v5 }
  0xf7   : > { %833 = vrot.lane.b32.xlu1 %v2731_v62, %s2188_s27 }
  0xf8   : > { %817 = vrot.lane.b32.xlu0 %v2267_v12, %s2188_s27 }
  0xf9   : > { %v910_v39 = vpop.permute.xlu1 %909 }
  0xfa   : > { %v894_v18 = vpop.permute.xlu0 %893 }
  0xfb   : > { %868 = vrot.lane.b32.xlu1 %v2155_v53, %s2189_s28  ;;  %v1125_v53 = vsel %vm1119_vm8, %v1092_v40, %v845_v42 }
  0xfc   : > { %852 = vrot.lane.b32.xlu0 %v2254_v2, %s2189_s28  ;;  %v1158_v50 = vsel %vm1152_vm9, %v1125_v53, %v892_v36  ;;  %v1011_v2 = vsel %vm987_vm4, %v978_v52, %v2687_v49  ;;  %v995_v49 = vsel %vm987_vm4, %v962_v20, %v2690_v41 }
  0xfd   : > { %v943_v6 = vpop.permute.xlu1 %942  ;;  %v1044_v10 = vsel %vm1020_vm6, %v1011_v2, %v2696_v26  ;;  %v1028_v55 = vsel %vm1020_vm6, %v995_v49, %v2698_v28 }
  0xfe   : > { %v1207_v34 = vsel %vm1185_vm10, %v1174_v0, %v943_v6  ;;  %v927_v7 = vpop.permute.xlu0 %926  ;;  %v1077_v22 = vsel %vm1053_vm5, %v1044_v10, %v2708_v63  ;;  %v1061_v26 = vsel %vm1053_vm5, %v1028_v55, %v2710_v4 }
  0xff   : > { %870 = vrot.lane.b32.xlu1 %v2734_v24, %s2189_s28  ;;  %2067 = vmatprep.mubr.msk.bf16.mxu1 %vm1238_vm11, %v1207_v34  ;;  %v1191_v47 = vsel %vm1185_vm10, %v1158_v50, %v927_v7  ;;  %v1110_v14 = vsel %vm1086_vm7, %v1077_v22, %v2719_v16  ;;  %v1094_v41 = vsel %vm1086_vm7, %v1061_v26, %v2721_v17  ;;  %v919_v17 = vrot.slane %v2734_v24, 1 }
 0x100   : > { %854 = vrot.lane.b32.xlu0 %v2159_v15, %s2189_s28  ;;  %2051 = vmatprep.mubr.msk.bf16.mxu0 %vm1238_vm11, %v1191_v47  ;;  %v1143_v5 = vsel %vm1119_vm8, %v1110_v14, %v863_v21  ;;  %v1127_v16 = vsel %vm1119_vm8, %v1094_v41, %v847_v57 }
 0x101   : > { %v628_v42 = vpop.permute.xlu1 %627  ;;  %v1176_v63 = vsel %vm1152_vm9, %v1143_v5, %v910_v39  ;;  %v1160_v36 = vsel %vm1152_vm9, %v1127_v16, %v894_v18  ;;  %v921_v37 = vsel %vm635_vm0, %v919_v17, %v920_v25 }
 0x102   : > { %v612_v61 = vpop.permute.xlu0 %611 }
 0x103   : > { %915 = vrot.lane.b32.xlu1 %v767_v54, %s2190_s7  ;;  %v964_v52 = vsel %vm954_vm3, %v2408_v44, %v612_v61 }
 0x104   : > { %899 = vrot.lane.b32.xlu0 %v2305_v51, %s2190_s7 }
 0x105   : > { %v945_v28 = vpop.permute.xlu1 %944 }
 0x106   : > { %v1209_v54 = vsel %vm1185_vm10, %v1176_v63, %v945_v28  ;;  %v929_v4 = vpop.permute.xlu0 %928 }
 0x107   : > { %917 = vrot.lane.b32.xlu1 %v886_v31, %s2190_s7  ;;  %2068 = vmatmul.mubr.msk.bf16.gmra.mrb[4].mxu1 %vm1238_vm11, %v1209_v54  ;;  %v1193_v21 = vsel %vm1185_vm10, %v1160_v36, %v929_v4 }
 0x108   : > { %901 = vrot.lane.b32.xlu0 %v2300_v48, %s2190_s7  ;;  %2052 = vmatmul.mubr.msk.bf16.gmra.mrb[4].mxu0 %vm1238_vm11, %v1193_v21 }
 0x109   : > { %v630_v51 = vpop.permute.xlu1 %629 }
 0x10a   : > { %v614_v57 = vpop.permute.xlu0 %613  ;;  %v982_v55 = vsel %vm954_vm3, %v2437_v9, %v630_v51 }
 0x10b   : > { %950 = vrot.lane.b32.xlu1 %v2731_v62, %s2191_s10  ;;  %v966_v31 = vsel %vm954_vm3, %v2442_v13, %v614_v57 }
 0x10c   : > { %934 = vrot.lane.b32.xlu0 %v2267_v12, %s2191_s10 }
 0x10d   : > { %v709_v11 = vpop.permute.xlu1 %708 }
 0x10e   : > { %v693_v33 = vpop.permute.xlu0 %692 }
 0x10f   : > { %952 = vrot.lane.b32.xlu1 %v921_v37, %s2191_s10  ;;  %v997_v2 = vsel %vm987_vm4, %v964_v52, %v693_v33 }
 0x110   : > { %936 = vrot.lane.b32.xlu0 %v2279_v23, %s2191_s10  ;;  %v980_v23 = vsel %vm954_vm3, %v2403_v43, %v628_v42 }
 0x111   : > { %v711_v48 = vpop.permute.xlu1 %710  ;;  %v1013_v34 = vsel %vm987_vm4, %v980_v23, %v709_v11 }
 0x112   : > { %v695_v24 = vpop.permute.xlu0 %694  ;;  %v1015_v26 = vsel %vm987_vm4, %v982_v55, %v711_v48 }
 0x113   : > { %v999_v28 = vsel %vm987_vm4, %v966_v31, %v695_v24 }
 0x115   : > { %v746_v30 = vpop.permute.xlu1 %745 }
 0x116   : > { %v730_v39 = vpop.permute.xlu0 %729  ;;  %v1046_v50 = vsel %vm1020_vm6, %v1013_v34, %v746_v30 }
 0x117   : > { %v1030_v38 = vsel %vm1020_vm6, %v997_v2, %v730_v39 }
 0x119   : > { %v748_v1 = vpop.permute.xlu1 %747 }
 0x11a   : > { %v732_v59 = vpop.permute.xlu0 %731  ;;  %v1048_v41 = vsel %vm1020_vm6, %v1015_v26, %v748_v1 }
 0x11b   : > { %v1032_v16 = vsel %vm1020_vm6, %v999_v28, %v732_v59 }
 0x11d   : > { %v793_v32 = vpop.permute.xlu1 %792 }
 0x11e   : > { %v777_v62 = vpop.permute.xlu0 %776  ;;  %v1079_v47 = vsel %vm1053_vm5, %v1046_v50, %v793_v32 }
 0x11f   : > { %v1063_v43 = vsel %vm1053_vm5, %v1030_v38, %v777_v62 }
 0x121   : > { %v795_v27 = vpop.permute.xlu1 %794 }
 0x122   : > { %v779_v18 = vpop.permute.xlu0 %778  ;;  %v1081_v9 = vsel %vm1053_vm5, %v1048_v41, %v795_v27 }
 0x123   : > { %v1065_v4 = vsel %vm1053_vm5, %v1032_v16, %v779_v18 }
 0x125   : > { %v828_v46 = vpop.permute.xlu1 %827 }
 0x126   : > { %v812_v19 = vpop.permute.xlu0 %811  ;;  %v1112_v8 = vsel %vm1086_vm7, %v1079_v47, %v828_v46 }
 0x127   : > { %v1096_v15 = vsel %vm1086_vm7, %v1063_v43, %v812_v19 }
 0x129   : > { %v830_v12 = vpop.permute.xlu1 %829 }
 0x12a   : > { %v814_v35 = vpop.permute.xlu0 %813  ;;  %v1114_v54 = vsel %vm1086_vm7, %v1081_v9, %v830_v12 }
 0x12b   : > { %v1098_v13 = vsel %vm1086_vm7, %v1065_v4, %v814_v35 }
 0x12d   : > { %v865_v29 = vpop.permute.xlu1 %864 }
 0x12e   : > { %v849_v60 = vpop.permute.xlu0 %848  ;;  %v1145_v10 = vsel %vm1119_vm8, %v1112_v8, %v865_v29 }
 0x12f   : > { %v1129_v49 = vsel %vm1119_vm8, %v1096_v15, %v849_v60 }
 0x131   : > { %v867_v40 = vpop.permute.xlu1 %866 }
 0x132   : > { %v851_v0 = vpop.permute.xlu0 %850  ;;  %v1147_v21 = vsel %vm1119_vm8, %v1114_v54, %v867_v40 }
 0x133   : > { %v1131_v51 = vsel %vm1119_vm8, %v1098_v13, %v851_v0 }
 0x135   : > { %v912_v6 = vpop.permute.xlu1 %911 }
 0x136   : > { %v896_v53 = vpop.permute.xlu0 %895  ;;  %v1178_v44 = vsel %vm1152_vm9, %v1145_v10, %v912_v6 }
 0x137   : > { %v1162_v14 = vsel %vm1152_vm9, %v1129_v49, %v896_v53 }
 0x139   : > { %v914_v7 = vpop.permute.xlu1 %913 }
 0x13a   : > { %v898_v20 = vpop.permute.xlu0 %897  ;;  %v1180_v17 = vsel %vm1152_vm9, %v1147_v21, %v914_v7 }
 0x13b   : > { %v1164_v37 = vsel %vm1152_vm9, %v1131_v51, %v898_v20 }
 0x13d   : > { %v947_v42 = vpop.permute.xlu1 %946 }
 0x13e   : > { %v1211_v22 = vsel %vm1185_vm10, %v1178_v44, %v947_v42  ;;  %v931_v61 = vpop.permute.xlu0 %930 }
 0x13f   : > { %2071 = vmatprep.mubr.msk.bf16.mxu1 %vm1238_vm11, %v1211_v22  ;;  %v1195_v5 = vsel %vm1185_vm10, %v1162_v14, %v931_v61 }
 0x140   : > { %2055 = vmatprep.mubr.msk.bf16.mxu0 %vm1238_vm11, %v1195_v5 }
 0x141   : > { %v632_v63 = vpop.permute.xlu1 %631 }
 0x142   : > { %v616_v36 = vpop.permute.xlu0 %615  ;;  %v984_v50 = vsel %vm954_vm3, %v2503_v56, %v632_v63 }
 0x143   : > { %v968_v47 = vsel %vm954_vm3, %v2509_v58, %v616_v36 }
 0x145   : > { %v949_v25 = vpop.permute.xlu1 %948 }
 0x146   : > { %v1213_v57 = vsel %vm1185_vm10, %v1180_v17, %v949_v25  ;;  %v933_v11 = vpop.permute.xlu0 %932 }
 0x147   : > { %2072 = vmatmul.mubr.msk.bf16.gmra.mrb[8].mxu1 %vm1238_vm11, %v1213_v57  ;;  %v1197_v33 = vsel %vm1185_vm10, %v1164_v37, %v933_v11  ;;  %v2907_v11 = vld [vmem:[%s3011_s2] ss:$0 sm:$0xff] }
 0x148   : > { %2056 = vmatmul.mubr.msk.bf16.gmra.mrb[8].mxu0 %vm1238_vm11, %v1197_v33  ;;  %v2912_v33 = vld [vmem:[%s3012_s3] ss:$0 sm:$0xff] }
 0x149   : > { %v634_v48 = vpop.permute.xlu1 %633 }
 0x14a   : > { %v618_v24 = vpop.permute.xlu0 %617  ;;  %v986_v10 = vsel %vm954_vm3, %v2565_v3, %v634_v48 }
 0x14b   : > { %v970_v22 = vsel %vm954_vm3, %v2577_v45, %v618_v24 }
 0x14d   : > { %v713_v30 = vpop.permute.xlu1 %712 }
 0x14e   : > { %v697_v39 = vpop.permute.xlu0 %696  ;;  %v1017_v2 = vsel %vm987_vm4, %v984_v50, %v713_v30 }
 0x14f   : > { %v1001_v20 = vsel %vm987_vm4, %v968_v47, %v697_v39 }
 0x151   : > { %v715_v1 = vpop.permute.xlu1 %714 }
 0x152   : > { %v699_v59 = vpop.permute.xlu0 %698  ;;  %v1019_v42 = vsel %vm987_vm4, %v986_v10, %v715_v1 }
 0x153   : > { %v1003_v26 = vsel %vm987_vm4, %v970_v22, %v699_v59 }
 0x155   : > { %v750_v32 = vpop.permute.xlu1 %749 }
 0x156   : > { %v734_v62 = vpop.permute.xlu0 %733  ;;  %v1050_v38 = vsel %vm1020_vm6, %v1017_v2, %v750_v32 }
 0x157   : > { %v1034_v15 = vsel %vm1020_vm6, %v1001_v20, %v734_v62 }
 0x159   : > { %v752_v27 = vpop.permute.xlu1 %751 }
 0x15a   : > { %v736_v18 = vpop.permute.xlu0 %735  ;;  %v1052_v55 = vsel %vm1020_vm6, %v1019_v42, %v752_v27 }
 0x15b   : > { %v1036_v63 = vsel %vm1020_vm6, %v1003_v26, %v736_v18 }
 0x15d   : > { %v797_v46 = vpop.permute.xlu1 %796 }
 0x15e   : > { %v781_v19 = vpop.permute.xlu0 %780  ;;  %v1083_v43 = vsel %vm1053_vm5, %v1050_v38, %v797_v46 }
 0x15f   : > { %v1067_v49 = vsel %vm1053_vm5, %v1034_v15, %v781_v19 }
 0x161   : > { %v799_v12 = vpop.permute.xlu1 %798 }
 0x162   : > { %v783_v35 = vpop.permute.xlu0 %782  ;;  %v1085_v5 = vsel %vm1053_vm5, %v1052_v55, %v799_v12 }
 0x163   : > { %v1069_v16 = vsel %vm1053_vm5, %v1036_v63, %v783_v35 }
 0x165   : > { %v832_v29 = vpop.permute.xlu1 %831 }
 0x166   : > { %v816_v60 = vpop.permute.xlu0 %815  ;;  %v1116_v56 = vsel %vm1086_vm7, %v1083_v43, %v832_v29 }
 0x167   : > { %v1100_v14 = vsel %vm1086_vm7, %v1067_v49, %v816_v60 }
 0x169   : > { %v834_v40 = vpop.permute.xlu1 %833 }
 0x16a   : > { %v818_v0 = vpop.permute.xlu0 %817  ;;  %v1118_v28 = vsel %vm1086_vm7, %v1085_v5, %v834_v40 }
 0x16b   : > { %v1102_v4 = vsel %vm1086_vm7, %v1069_v16, %v818_v0 }
 0x16d   : > { %v869_v6 = vpop.permute.xlu1 %868 }
 0x16e   : > { %v853_v23 = vpop.permute.xlu0 %852  ;;  %v1149_v58 = vsel %vm1119_vm8, %v1116_v56, %v869_v6 }
 0x16f   : > { %v1133_v31 = vsel %vm1119_vm8, %v1100_v14, %v853_v23 }
 0x171   : > { %v871_v53 = vpop.permute.xlu1 %870 }
 0x172   : > { %v855_v34 = vpop.permute.xlu0 %854  ;;  %v1151_v54 = vsel %vm1119_vm8, %v1118_v28, %v871_v53 }
 0x173   : > { %v1135_v17 = vsel %vm1119_vm8, %v1102_v4, %v855_v34 }
 0x175   : > { %v916_v52 = vpop.permute.xlu1 %915 }
 0x176   : > { %v900_v7 = vpop.permute.xlu0 %899  ;;  %v1182_v3 = vsel %vm1152_vm9, %v1149_v58, %v916_v52 }
 0x177   : > { %v1166_v45 = vsel %vm1152_vm9, %v1133_v31, %v900_v7 }
 0x179   : > { %v918_v8 = vpop.permute.xlu1 %917 }
 0x17a   : > { %v902_v44 = vpop.permute.xlu0 %901  ;;  %v1184_v21 = vsel %vm1152_vm9, %v1151_v54, %v918_v8 }
 0x17b   : > { %v1168_v51 = vsel %vm1152_vm9, %v1135_v17, %v902_v44 }
 0x17d   : > { %v951_v61 = vpop.permute.xlu1 %950 }
 0x17e   : > { %v1215_v41 = vsel %vm1185_vm10, %v1182_v3, %v951_v61  ;;  %v935_v9 = vpop.permute.xlu0 %934 }
 0x17f   : > { %2075 = vmatprep.mubr.msk.bf16.mxu1 %vm1238_vm11, %v1215_v41  ;;  %v1199_v36 = vsel %vm1185_vm10, %v1166_v45, %v935_v9 }
 0x180   : > { %2059 = vmatprep.mubr.msk.bf16.mxu0 %vm1238_vm11, %v1199_v36 }
 0x181   : > { %v953_v13 = vpop.permute.xlu1 %952 }
 0x182   : > { %v1217_v25 = vsel %vm1185_vm10, %v1184_v21, %v953_v13  ;;  %v937_v57 = vpop.permute.xlu0 %936 }
 0x183   : > { %2076 = vmatmul.mubr.msk.bf16.gmra.mrb[12].mxu1 %vm1238_vm11, %v1217_v25  ;;  %v1201_v37 = vsel %vm1185_vm10, %v1168_v51, %v937_v57 }
 0x184   : > { %2060 = vmatmul.mubr.msk.bf16.gmra.mrb[12].mxu0 %vm1238_vm11, %v1201_v37 }
 0x19a   : > { %v2065_v48 = vpop.f32.mrb[0].mxu1 }
 0x19b   : > { %v1461_v24 = vmul.f32 %v2065_v48, %v2907_v11  ;;  %v1373_v30 = vpop.f32.mrb[1].mxu1  ;;  %v2049_v39 = vpop.f32.mrb[0].mxu0 }
 0x19c   : > { %v1459_v1 = vmul.f32 %v2907_v11, %v1373_v30  ;;  %v2066_v59 = vpop.f32.mrb[2].mxu1  ;;  %v1445_v32 = vmul.f32 %v2049_v39, %v2907_v11  ;;  %v1309_v27 = vpop.f32.mrb[1].mxu0 }
 0x19d   : > { %v1500_v62 = vadd.f32 %v2912_v33, %v1461_v24  ;;  %v1462_v18 = vmul.f32 %v2066_v59, %v2907_v11  ;;  %v1376_v46 = vpop.f32.mrb[3].mxu1  ;;  %v1443_v19 = vmul.f32 %v2907_v11, %v1309_v27  ;;  %v2050_v35 = vpop.f32.mrb[2].mxu0 }
 0x19e   : > { %v1498_v12 = vadd.f32 %v2912_v33, %v1459_v1  ;;  %v1460_v29 = vmul.f32 %v2907_v11, %v1376_v46  ;;  %v1484_v60 = vadd.f32 %v2912_v33, %v1445_v32  ;;  %v1446_v40 = vmul.f32 %v2050_v35, %v2907_v11  ;;  %v1312_v6 = vpop.f32.mrb[3].mxu0 }
 0x19f   : > { %v1501_v0 = vadd.f32 %v2912_v33, %v1462_v18  ;;  %v1482_v23 = vadd.f32 %v2912_v33, %v1443_v19  ;;  %v1444_v53 = vmul.f32 %v2907_v11, %v1312_v6  ;;  %v1532_v52 = vmax.f32 %v1500_v62, 0.0 }
 0x1a0   : > { %v1499_v34 = vadd.f32 %v2912_v33, %v1460_v29  ;;  %v1485_v50 = vadd.f32 %v2912_v33, %v1446_v40  ;;  %v1530_v2 = vmax.f32 %v1498_v12, 0.0  ;;  %v1516_v8 = vmax.f32 %v1484_v60, 0.0 }
 0x1a1   : > { %v1533_v7 = vmax.f32 %v1501_v0, 0.0  ;;  %v1483_v47 = vadd.f32 %v2912_v33, %v1444_v53  ;;  %v1514_v10 = vmax.f32 %v1482_v23, 0.0 }
 0x1a2   : > { %v1531_v38 = vmax.f32 %v1499_v34, 0.0  ;;  %v1517_v20 = vmax.f32 %v1485_v50, 0.0 }
 0x1a3   : > { %v1975_v43 = vpack.c.bf16 %v1533_v7, %v1532_v52  ;;  %v1515_v15 = vmax.f32 %v1483_v47, 0.0 }
 0x1a4   : > { %v1970_v56 = vpack.c.bf16 %v1531_v38, %v1530_v2  ;;  %v1935_v44 = vpack.c.bf16 %v1517_v20, %v1516_v8 }
 0x1a5   : > { %2015 = vst [vmem:[%s2933_s15 + $0x48] sm:$0xff] %v1975_v43   ;;  %v1930_v42 = vpack.c.bf16 %v1515_v15, %v1514_v10 }
 0x1a6   : > { %2014 = vst [vmem:[%s2933_s15 + $0x40] sm:$0xff] %v1970_v56   ;;  %2007 = vst [vmem:[%s2933_s15 + $0x8] sm:$0xff] %v1935_v44  }
 0x1a7   : > { %1931 = vst [vmem:[%s2933_s15] sm:$0xff] %v1930_v42  }
 0x1da   : > { %v2069_v49 = vpop.f32.mrb[4].mxu1 }
 0x1db   : > { %v1465_v58 = vmul.f32 %v2069_v49, %v2907_v11  ;;  %v1389_v22 = vpop.f32.mrb[5].mxu1  ;;  %v2053_v55 = vpop.f32.mrb[4].mxu0 }
 0x1dc   : > { %v1463_v14 = vmul.f32 %v2907_v11, %v1389_v22  ;;  %v2070_v3 = vpop.f32.mrb[6].mxu1  ;;  %v1449_v61 = vmul.f32 %v2053_v55, %v2907_v11  ;;  %v1325_v5 = vpop.f32.mrb[5].mxu0 }
 0x1dd   : > { %v1504_v26 = vadd.f32 %v2912_v33, %v1465_v58  ;;  %v1466_v31 = vmul.f32 %v2070_v3, %v2907_v11  ;;  %v1392_v41 = vpop.f32.mrb[7].mxu1  ;;  %v1447_v63 = vmul.f32 %v2907_v11, %v1325_v5  ;;  %v2054_v45 = vpop.f32.mrb[6].mxu0 }
 0x1de   : > { %v1502_v28 = vadd.f32 %v2912_v33, %v1463_v14  ;;  %v1464_v9 = vmul.f32 %v2907_v11, %v1392_v41  ;;  %v1488_v16 = vadd.f32 %v2912_v33, %v1449_v61  ;;  %v1450_v54 = vmul.f32 %v2054_v45, %v2907_v11  ;;  %v1328_v4 = vpop.f32.mrb[7].mxu0 }
 0x1df   : > { %v1505_v36 = vadd.f32 %v2912_v33, %v1466_v31  ;;  %v1486_v21 = vadd.f32 %v2912_v33, %v1447_v63  ;;  %v1448_v13 = vmul.f32 %v2907_v11, %v1328_v4  ;;  %v1536_v25 = vmax.f32 %v1504_v26, 0.0 }
 0x1e0   : > { %v1503_v17 = vadd.f32 %v2912_v33, %v1464_v9  ;;  %v1489_v51 = vadd.f32 %v2912_v33, %v1450_v54  ;;  %v1534_v37 = vmax.f32 %v1502_v28, 0.0  ;;  %v1520_v30 = vmax.f32 %v1488_v16, 0.0 }
 0x1e1   : > { %v1537_v57 = vmax.f32 %v1505_v36, 0.0  ;;  %v1487_v48 = vadd.f32 %v2912_v33, %v1448_v13  ;;  %v1518_v59 = vmax.f32 %v1486_v21, 0.0 }
 0x1e2   : > { %v1535_v24 = vmax.f32 %v1503_v17, 0.0  ;;  %v1521_v39 = vmax.f32 %v1489_v51, 0.0 }
 0x1e3   : > { %v1985_v1 = vpack.c.bf16 %v1537_v57, %v1536_v25  ;;  %v1519_v32 = vmax.f32 %v1487_v48, 0.0 }
 0x1e4   : > { %v1980_v62 = vpack.c.bf16 %v1535_v24, %v1534_v37  ;;  %v1945_v27 = vpack.c.bf16 %v1521_v39, %v1520_v30 }
 0x1e5   : > { %2017 = vst [vmem:[%s2933_s15 + $0x58] sm:$0xff] %v1985_v1   ;;  %v1940_v18 = vpack.c.bf16 %v1519_v32, %v1518_v59 }
 0x1e6   : > { %2016 = vst [vmem:[%s2933_s15 + $0x50] sm:$0xff] %v1980_v62   ;;  %2009 = vst [vmem:[%s2933_s15 + $0x18] sm:$0xff] %v1945_v27  }
 0x1e7   : > { %2008 = vst [vmem:[%s2933_s15 + $0x10] sm:$0xff] %v1940_v18  }
 0x21a   : > { %v2073_v46 = vpop.f32.mrb[8].mxu1 }
 0x21b   : > { %v1469_v19 = vmul.f32 %v2073_v46, %v2907_v11  ;;  %v1405_v12 = vpop.f32.mrb[9].mxu1  ;;  %v2057_v35 = vpop.f32.mrb[8].mxu0 }
 0x21c   : > { %v1467_v29 = vmul.f32 %v2907_v11, %v1405_v12  ;;  %v2074_v60 = vpop.f32.mrb[10].mxu1  ;;  %v1453_v40 = vmul.f32 %v2057_v35, %v2907_v11  ;;  %v1341_v6 = vpop.f32.mrb[9].mxu0 }
 0x21d   : > { %v1508_v0 = vadd.f32 %v2912_v33, %v1469_v19  ;;  %v1470_v23 = vmul.f32 %v2074_v60, %v2907_v11  ;;  %v1408_v53 = vpop.f32.mrb[11].mxu1  ;;  %v1451_v34 = vmul.f32 %v2907_v11, %v1341_v6  ;;  %v2058_v50 = vpop.f32.mrb[10].mxu0 }
 0x21e   : > { %v1506_v52 = vadd.f32 %v2912_v33, %v1467_v29  ;;  %v1468_v7 = vmul.f32 %v2907_v11, %v1408_v53  ;;  %v1492_v2 = vadd.f32 %v2912_v33, %v1453_v40  ;;  %v1454_v47 = vmul.f32 %v2058_v50, %v2907_v11  ;;  %v1344_v8 = vpop.f32.mrb[11].mxu0 }
 0x21f   : > { %v1509_v38 = vadd.f32 %v2912_v33, %v1470_v23  ;;  %v1490_v20 = vadd.f32 %v2912_v33, %v1451_v34  ;;  %v1452_v43 = vmul.f32 %v2907_v11, %v1344_v8  ;;  %v1540_v15 = vmax.f32 %v1508_v0, 0.0 }
 0x220   : > { %v1507_v10 = vadd.f32 %v2912_v33, %v1468_v7  ;;  %v1493_v56 = vadd.f32 %v2912_v33, %v1454_v47  ;;  %v1538_v42 = vmax.f32 %v1506_v52, 0.0  ;;  %v1524_v22 = vmax.f32 %v1492_v2, 0.0 }
 0x221   : > { %v1541_v44 = vmax.f32 %v1509_v38, 0.0  ;;  %v1491_v49 = vadd.f32 %v2912_v33, %v1452_v43  ;;  %v1522_v3 = vmax.f32 %v1490_v20, 0.0 }
 0x222   : > { %v1539_v58 = vmax.f32 %v1507_v10, 0.0  ;;  %v1525_v55 = vmax.f32 %v1493_v56, 0.0 }
 0x223   : > { %v1995_v14 = vpack.c.bf16 %v1541_v44, %v1540_v15  ;;  %v1523_v61 = vmax.f32 %v1491_v49, 0.0 }
 0x224   : > { %v1990_v26 = vpack.c.bf16 %v1539_v58, %v1538_v42  ;;  %v1955_v5 = vpack.c.bf16 %v1525_v55, %v1524_v22 }
 0x225   : > { %2019 = vst [vmem:[%s2933_s15 + $0x68] sm:$0xff] %v1995_v14   ;;  %v1950_v31 = vpack.c.bf16 %v1523_v61, %v1522_v3 }
 0x226   : > { %2018 = vst [vmem:[%s2933_s15 + $0x60] sm:$0xff] %v1990_v26   ;;  %2011 = vst [vmem:[%s2933_s15 + $0x28] sm:$0xff] %v1955_v5  }
 0x227   : > { %2010 = vst [vmem:[%s2933_s15 + $0x20] sm:$0xff] %v1950_v31  }
 0x256   : > { %v2077_v41 = vpop.f32.mrb[12].mxu1 }
 0x257   : > { %v1473_v63 = vmul.f32 %v2077_v41, %v2907_v11  ;;  %v1421_v28 = vpop.f32.mrb[13].mxu1  ;;  %v2061_v45 = vpop.f32.mrb[12].mxu0 }
 0x258   : > { %v1471_v9 = vmul.f32 %v2907_v11, %v1421_v28  ;;  %v2078_v16 = vpop.f32.mrb[14].mxu1  ;;  %v1457_v54 = vmul.f32 %v2061_v45, %v2907_v11  ;;  %v1357_v4 = vpop.f32.mrb[13].mxu0 }
 0x259   : > { %v1512_v36 = vadd.f32 %v2912_v33, %v1473_v63  ;;  %v1474_v21 = vmul.f32 %v2078_v16, %v2907_v11  ;;  %v1424_v13 = vpop.f32.mrb[15].mxu1  ;;  %v1455_v17 = vmul.f32 %v2907_v11, %v1357_v4  ;;  %v2062_v51 = vpop.f32.mrb[14].mxu0 }
 0x25a   : > { %v1510_v25 = vadd.f32 %v2912_v33, %v1471_v9  ;;  %v1472_v57 = vmul.f32 %v2907_v11, %v1424_v13  ;;  %v1496_v37 = vadd.f32 %v2912_v33, %v1457_v54  ;;  %v1458_v48 = vmul.f32 %v2062_v51, %v2907_v11  ;;  %v1360_v30 = vpop.f32.mrb[15].mxu0 }
 0x25b   : > { %v1513_v24 = vadd.f32 %v2912_v33, %v1474_v21  ;;  %v1494_v39 = vadd.f32 %v2912_v33, %v1455_v17  ;;  %v1456_v1 = vmul.f32 %v2907_v11, %v1360_v30  ;;  %v1544_v32 = vmax.f32 %v1512_v36, 0.0 }
 0x25c   : > { %v1511_v59 = vadd.f32 %v2912_v33, %v1472_v57  ;;  %v1497_v62 = vadd.f32 %v2912_v33, %v1458_v48  ;;  %v1542_v18 = vmax.f32 %v1510_v25, 0.0  ;;  %v1528_v12 = vmax.f32 %v1496_v37, 0.0 }
 0x25d   : > { %v1545_v27 = vmax.f32 %v1513_v24, 0.0  ;;  %v1495_v46 = vadd.f32 %v2912_v33, %v1456_v1  ;;  %v1526_v60 = vmax.f32 %v1494_v39, 0.0 }
 0x25e   : > { %v1543_v19 = vmax.f32 %v1511_v59, 0.0  ;;  %v1529_v35 = vmax.f32 %v1497_v62, 0.0 }
 0x25f   : > { %v2005_v29 = vpack.c.bf16 %v1545_v27, %v1544_v32  ;;  %v1527_v40 = vmax.f32 %v1495_v46, 0.0 }
 0x260   : > { %v2000_v0 = vpack.c.bf16 %v1543_v19, %v1542_v18  ;;  %v1965_v11 = vpack.c.bf16 %v1529_v35, %v1528_v12 }
 0x261   : > { %2021 = vst [vmem:[%s2933_s15 + $0x78] sm:$0xff] %v2005_v29   ;;  %v1960_v6 = vpack.c.bf16 %v1527_v40, %v1526_v60 }
 0x262   : > { %2020 = vst [vmem:[%s2933_s15 + $0x70] sm:$0xff] %v2000_v0   ;;  %2013 = vst [vmem:[%s2933_s15 + $0x38] sm:$0xff] %v1965_v11  }
 0x263   : > { %2012 = vst [vmem:[%s2933_s15 + $0x30] sm:$0xff] %v1960_v6  }
 0x264 PF: > { %s14_s17 = sadd.s32 1, %s2182_s17   ;;  %s3014_s15 = smov %s2178_s16 }
 0x265   : > { %p11_p5 = scmp.ge.s32.totalorder %s14_s17, 4   ;;  %s3015_s16 = smov %s3017_s18 }
 0x267   :  { %13 = sbr.rel (!%p11_p5) target bundleno = 2 (0x2), region = 67 }

</bundles_post_ra>
